<compile_context>
chip_gen: v6e
topology: v6e:2x2x1
jax: 0.10.0
libtpu: 0.0.40
codegen_flags: <defaults>
</compile_context>

<pallas_src>
import functools

import jax
import jax.numpy as jnp
from jax.experimental import pallas as pl
from jax.experimental.pallas import tpu as pltpu


def _bce_duie_kernel(logits_ref, labels_ref, mask_ref, out_ref,
                     num_acc, den_acc, *, weight_coef, num_classes):
    """One lane-dense (tb, ts*C) tile of weighted, masked BCE-with-logits."""
    s_idx = pl.program_id(1)

    @pl.when(s_idx == 0)
    def _init():
        num_acc[...] = jnp.zeros_like(num_acc)
        den_acc[...] = jnp.zeros_like(den_acc)

    # Flat lane-dense tiles (tb, ts*C); f32 in-kernel math (v5e has no bf16
    # VPU/EUP; on v6e/v7x a bf16 elementwise path is a possible further tweak).
    x = logits_ref[...].astype(jnp.float32)
    y = labels_ref[...].astype(jnp.float32)
    m = mask_ref[...].astype(jnp.float32)          # (tb, ts)
    tb, ts = m.shape

    # Numerically stable BCE-with-logits (reduction='none'):
    #   max(x, 0) - x*y + log1p(exp(-|x|))
    bce = jnp.maximum(x, 0.0) - x * y + jnp.log1p(jnp.exp(-jnp.abs(x)))
    # weight_matrix = 1 + labels * (args.weight_coef - 1)
    wl = bce * (1.0 + y * weight_coef)              # (tb, ts*C)

    # Expand the per-token mask across the C classes of each token.  Row-major
    # flattening means token s occupies lanes [s*C, (s+1)*C).
    m_flat = jnp.broadcast_to(
        m[:, :, None], (tb, ts, num_classes)).reshape(tb, ts * num_classes)

    num_acc[...] += jnp.sum(wl * m_flat, axis=1, keepdims=True)   # (tb, 1)
    den_acc[...] += jnp.sum(m, axis=1, keepdims=True)             # (tb, 1)

    @pl.when(s_idx == pl.num_programs(1) - 1)
    def _finalize():
        # sum_s(mean_c(masked loss)) / sum_s(mask)
        #   == sum_{s,c}(masked loss) / (C * sum_s(mask))
        # Like the PyTorch module, an all-zero mask row yields inf/nan.
        per_batch = num_acc[...] / (den_acc[...] * float(num_classes))
        out_ref[...] = jnp.broadcast_to(per_batch, out_ref.shape)


def _sublane_granule(min_itemsize):
    # Sublane packing granule for the narrowest dtype crossing the boundary.
    return {4: 8, 2: 16, 1: 32}.get(int(min_itemsize), 8)


def _choose_tile_b(batch, granule):
    if batch % granule != 0:
        return batch                       # single (padded) batch block
    best = granule
    for d in range(granule, min(batch, 128) + 1, granule):
        # Keep >= 2 batch steps so both v7x TensorCores get "parallel" work.
        if batch % d == 0 and batch // d >= 2:
            best = d
    return best


def _choose_tile_s(tile_b, seq, num_classes, itemsize, budget_bytes):
    full_bytes = tile_b * seq * num_classes * itemsize
    if full_bytes <= budget_bytes:
        return seq
    # Sequence chunks that are multiples of 128 keep both the flat (tb, ts*C)
    # logits/labels blocks and the (tb, ts) mask block lane-aligned.
    cands = [d for d in range(128, seq, 128) if seq % d == 0]
    fitting = [d for d in cands
               if tile_b * d * num_classes * itemsize <= budget_bytes]
    if fitting:
        return max(fitting)
    if cands:
        return min(cands)                  # smallest legal split (soft budget)
    return seq                             # no legal split: whole sequence axis


def _vmem_limit_bytes():
    # Derive a safe scoped-VMEM limit from the chip (v7x has only 64 MiB
    # physical VMEM vs 128 MiB on v5e/v6e); never request more than half.
    try:
        cap = int(pltpu.get_tpu_info().vmem_capacity_bytes)
    except Exception:
        cap = 64 * 1024 * 1024             # conservative: v7x physical VMEM
    return int(min(cap // 2, 48 * 1024 * 1024))


def bce_loss_for_duie_bio(logits, labels, mask, weight_coef_arg):
    """Mirrors BCELossForDuIE_BIO(args).forward(logits, labels, mask).

    logits/labels: (B, S, C), f32 or bf16 (upcast to f32 inside the kernel).
    mask: (B, S); float dtypes are kept as-is, bool/int cast to bf16 at the
    boundary (0/1 masks are exact) and to f32 in-kernel (== mask.float()).
    weight_coef_arg corresponds to args.weight_coef (the module stores coef-1).
    """
    B, S, C = logits.shape
    weight_coef = float(weight_coef_arg) - 1.0

    if not jnp.issubdtype(mask.dtype, jnp.floating):
        mask = mask.astype(jnp.bfloat16)

    # Lane-dense layout: flatten (S, C) -> S*C so the last (lane) dim is wide
    # even when C < 128.  Row-major reshape => free, no transpose.  (For
    # C % 128 == 0 this flat path is equally lane-dense, so one path suffices.)
    logits2 = logits.reshape(B, S * C)
    labels2 = labels.reshape(B, S * C)

    itemsize = max(logits.dtype.itemsize, labels.dtype.itemsize)
    min_itemsize = min(logits.dtype.itemsize, labels.dtype.itemsize,
                       mask.dtype.itemsize)
    vmem_limit = _vmem_limit_bytes()
    # 2 inputs x 2 pipeline buffers per tile, plus headroom for mask/out/scratch.
    tile_budget = min(8 * 1024 * 1024, (vmem_limit - 4 * 1024 * 1024) // 4)

    granule = _sublane_granule(min_itemsize)
    tb = _choose_tile_b(B, granule)
    ts = _choose_tile_s(tb, S, C, itemsize, tile_budget)
    if tb > granule and tb * ts * C * itemsize > tile_budget:
        tb = granule
        ts = _choose_tile_s(tb, S, C, itemsize, tile_budget)
    lt = ts * C
    grid = (B // tb, S // ts)

    kernel = functools.partial(
        _bce_duie_kernel, weight_coef=weight_coef, num_classes=C)

    cost = pl.CostEstimate(
        flops=int(12 * B * S * C),
        transcendentals=int(2 * B * S * C),
        bytes_accessed=int(logits2.size * logits.dtype.itemsize
                           + labels2.size * labels.dtype.itemsize
                           + mask.size * mask.dtype.itemsize
                           + B * 128 * 4),
    )

    out = pl.pallas_call(
        kernel,
        out_shape=jax.ShapeDtypeStruct((B, 128), jnp.float32),
        grid_spec=pltpu.PrefetchScalarGridSpec(
            num_scalar_prefetch=0,
            grid=grid,
            in_specs=[
                pl.BlockSpec((tb, lt), lambda b, s: (b, s)),   # flat logits
                pl.BlockSpec((tb, lt), lambda b, s: (b, s)),   # flat labels
                pl.BlockSpec((tb, ts), lambda b, s: (b, s)),   # mask chunk
            ],
            out_specs=pl.BlockSpec((tb, 128), lambda b, s: (b, 0)),
            scratch_shapes=[
                pltpu.VMEM((tb, 1), jnp.float32),   # per-row loss numerator
                pltpu.VMEM((tb, 1), jnp.float32),   # per-row sum(mask)
            ],
        ),
        compiler_params=pltpu.CompilerParams(
            dimension_semantics=("parallel", "arbitrary"),
            vmem_limit_bytes=vmem_limit),
        cost_estimate=cost,
    )(logits2, labels2, mask)

    # Per-batch loss lives in lane 0 of each row; batch mean is trivial in XLA.
    return jnp.mean(out[:, 0])


def _reference(logits, labels, mask, weight_coef_arg):
    # Pure-JAX reference (same math as the PyTorch module).
    wc = float(weight_coef_arg) - 1.0
    x = logits.astype(jnp.float32)
    y = labels.astype(jnp.float32)
    m = mask.astype(jnp.float32)
    bce = jnp.maximum(x, 0.0) - x * y + jnp.log1p(jnp.exp(-jnp.abs(x)))
    loss = bce * (1.0 + y * wc)
    loss = loss * m[:, :, None]
    per_batch = jnp.sum(jnp.mean(loss, axis=2), axis=1) / jnp.sum(m, axis=1)
    return jnp.mean(per_batch)


if __name__ == "__main__":
    key = jax.random.PRNGKey(0)
    k1, k2 = jax.random.split(key, 2)

    B, S, C = 2, 8, 32           # batch, sequence length, num BIO classes
    weight_coef_arg = 3.0        # plays the role of args.weight_coef

    # bf16 inputs exercise the reduced-bandwidth path; labels/mask are 0/1 so
    # bf16 is exact, and the kernel upcasts to f32 internally.
    logits = jax.random.normal(k1, (B, S, C), dtype=jnp.float32).astype(jnp.bfloat16)
    labels = jax.random.bernoulli(k2, p=0.2, shape=(B, S, C)).astype(jnp.bfloat16)
    # Mask: first part of each sequence valid, rest padded (never all-zero).
    valid_lens = jnp.array([6, 4], dtype=jnp.int32)
    mask = (jnp.arange(S)[None, :] < valid_lens[:, None]).astype(jnp.bfloat16)

    loss = bce_loss_for_duie_bio(logits, labels, mask, weight_coef_arg)
    loss = jax.block_until_ready(loss)

    ref = _reference(logits, labels, mask, weight_coef_arg)
    assert jnp.allclose(loss, ref, rtol=1e-4, atol=1e-5), (loss, ref)

    print("KERNEL_OK")
</pallas_src>

<mosaic_0001>
module attributes {stable_mosaic.version = 11 : i64} {
  func.func @_bce_duie_kernel(%arg0: i32, %arg1: i32, %arg2: memref<2x256xbf16, #tpu.memory_space<vmem>>, %arg3: memref<2x256xbf16, #tpu.memory_space<vmem>>, %arg4: memref<2x8xbf16, #tpu.memory_space<vmem>>, %arg5: memref<2x128xf32, #tpu.memory_space<vmem>>, %arg6: memref<2x1xf32, #tpu.memory_space<vmem>>, %arg7: memref<2x1xf32, #tpu.memory_space<vmem>>) attributes {dimension_semantics = [#tpu.dimension_semantics<parallel>, #tpu.dimension_semantics<arbitrary>], iteration_bounds = array<i64: 1, 1>, scalar_prefetch = 0 : i64, scratch_operands = 2 : i64, tpu.core_type = #tpu.core_type<tc>, window_params = [{transform_indices = @transform_0, window_bounds = array<i64: 2, 256>}, {transform_indices = @transform_1, window_bounds = array<i64: 2, 256>}, {transform_indices = @transform_2, window_bounds = array<i64: 2, 8>}, {transform_indices = @transform_3, window_bounds = array<i64: 2, 128>}]} {
    %c0_i32 = arith.constant 0 : i32
    %0 = arith.cmpi eq, %arg1, %c0_i32 : i32
    %1 = arith.extui %0 : i1 to i32
    %c0_i32_0 = arith.constant 0 : i32
    %2 = arith.cmpi ne, %1, %c0_i32_0 : i32
    scf.if %2 {
      %cst_21 = arith.constant 0.000000e+00 : f32
      %42 = vector.broadcast %cst_21 : f32 to vector<2x1xf32>
      %c0_22 = arith.constant 0 : index
      %c0_23 = arith.constant 0 : index
      %43 = vector.load %arg6[%c0_22, %c0_23] : memref<2x1xf32, #tpu.memory_space<vmem>>, vector<2x1xf32>
      tpu.vector_store %arg6[%c0_22, %c0_23], %42 {strides = array<i32>} : memref<2x1xf32, #tpu.memory_space<vmem>>, vector<2x1xf32>,
      %cst_24 = arith.constant 0.000000e+00 : f32
      %44 = vector.broadcast %cst_24 : f32 to vector<2x1xf32>
      %c0_25 = arith.constant 0 : index
      %c0_26 = arith.constant 0 : index
      %45 = vector.load %arg7[%c0_25, %c0_26] : memref<2x1xf32, #tpu.memory_space<vmem>>, vector<2x1xf32>
      tpu.vector_store %arg7[%c0_25, %c0_26], %44 {strides = array<i32>} : memref<2x1xf32, #tpu.memory_space<vmem>>, vector<2x1xf32>,
    } else {
    }
    %c0 = arith.constant 0 : index
    %c0_1 = arith.constant 0 : index
    %3 = vector.load %arg2[%c0, %c0_1] : memref<2x256xbf16, #tpu.memory_space<vmem>>, vector<2x256xbf16>
    %4 = arith.extf %3 : vector<2x256xbf16> to vector<2x256xf32>
    %c0_2 = arith.constant 0 : index
    %c0_3 = arith.constant 0 : index
    %5 = vector.load %arg3[%c0_2, %c0_3] : memref<2x256xbf16, #tpu.memory_space<vmem>>, vector<2x256xbf16>
    %6 = arith.extf %5 : vector<2x256xbf16> to vector<2x256xf32>
    %c0_4 = arith.constant 0 : index
    %c0_5 = arith.constant 0 : index
    %7 = vector.load %arg4[%c0_4, %c0_5] : memref<2x8xbf16, #tpu.memory_space<vmem>>, vector<2x8xbf16>
    %8 = arith.extf %7 : vector<2x8xbf16> to vector<2x8xf32>
    %cst = arith.constant 0.000000e+00 : f32
    %9 = vector.broadcast %cst : f32 to vector<2x256xf32>
    %10 = arith.maximumf %4, %9 : vector<2x256xf32>
    %11 = arith.mulf %4, %6 : vector<2x256xf32>
    %12 = arith.subf %10, %11 : vector<2x256xf32>
    %13 = math.absf %4 : vector<2x256xf32>
    %cst_6 = arith.constant 0.000000e+00 : f32
    %14 = vector.broadcast %cst_6 : f32 to vector<2x256xf32>
    %15 = arith.subf %14, %13 : vector<2x256xf32>
    %16 = math.exp %15 : vector<2x256xf32>
    %17 = math.log1p %16 : vector<2x256xf32>
    %18 = arith.addf %12, %17 : vector<2x256xf32>
    %cst_7 = arith.constant 2.000000e+00 : f32
    %19 = vector.broadcast %cst_7 : f32 to vector<2x256xf32>
    %20 = arith.mulf %6, %19 : vector<2x256xf32>
    %cst_8 = arith.constant 1.000000e+00 : f32
    %21 = vector.broadcast %cst_8 : f32 to vector<2x256xf32>
    %22 = arith.addf %21, %20 : vector<2x256xf32>
    %23 = arith.mulf %18, %22 : vector<2x256xf32>
    %24 = vector.shape_cast %8 : vector<2x8xf32> to vector<2x8x1xf32>
    %25 = vector.shape_cast %24 : vector<2x8x1xf32> to vector<2x8x1xf32>
    %26 = vector.broadcast %25 : vector<2x8x1xf32> to vector<2x8x32xf32>
    %27 = vector.shape_cast %26 : vector<2x8x32xf32> to vector<2x256xf32>
    %c0_9 = arith.constant 0 : index
    %c0_10 = arith.constant 0 : index
    %28 = vector.load %arg6[%c0_9, %c0_10] : memref<2x1xf32, #tpu.memory_space<vmem>>, vector<2x1xf32>
    %29 = arith.mulf %23, %27 : vector<2x256xf32>
    %cst_11 = arith.constant dense<0.000000e+00> : vector<2xf32>
    %30 = vector.multi_reduction <add>, %29, %cst_11 [1] : vector<2x256xf32> to vector<2xf32>
    %31 = vector.shape_cast %30 : vector<2xf32> to vector<2x1xf32>
    %32 = arith.addf %28, %31 : vector<2x1xf32>
    %c0_12 = arith.constant 0 : index
    %c0_13 = arith.constant 0 : index
    %33 = vector.load %arg6[%c0_12, %c0_13] : memref<2x1xf32, #tpu.memory_space<vmem>>, vector<2x1xf32>
    tpu.vector_store %arg6[%c0_12, %c0_13], %32 {strides = array<i32>} : memref<2x1xf32, #tpu.memory_space<vmem>>, vector<2x1xf32>,
    %c0_14 = arith.constant 0 : index
    %c0_15 = arith.constant 0 : index
    %34 = vector.load %arg7[%c0_14, %c0_15] : memref<2x1xf32, #tpu.memory_space<vmem>>, vector<2x1xf32>
    %cst_16 = arith.constant dense<0.000000e+00> : vector<2xf32>
    %35 = vector.multi_reduction <add>, %8, %cst_16 [1] : vector<2x8xf32> to vector<2xf32>
    %36 = vector.shape_cast %35 : vector<2xf32> to vector<2x1xf32>
    %37 = arith.addf %34, %36 : vector<2x1xf32>
    %c0_17 = arith.constant 0 : index
    %c0_18 = arith.constant 0 : index
    %38 = vector.load %arg7[%c0_17, %c0_18] : memref<2x1xf32, #tpu.memory_space<vmem>>, vector<2x1xf32>
    tpu.vector_store %arg7[%c0_17, %c0_18], %37 {strides = array<i32>} : memref<2x1xf32, #tpu.memory_space<vmem>>, vector<2x1xf32>,
    %c0_i32_19 = arith.constant 0 : i32
    %39 = arith.cmpi eq, %arg1, %c0_i32_19 : i32
    %40 = arith.extui %39 : i1 to i32
    %c0_i32_20 = arith.constant 0 : i32
    %41 = arith.cmpi ne, %40, %c0_i32_20 : i32
    scf.if %41 {
      %c0_21 = arith.constant 0 : index
      %c0_22 = arith.constant 0 : index
      %42 = vector.load %arg6[%c0_21, %c0_22] : memref<2x1xf32, #tpu.memory_space<vmem>>, vector<2x1xf32>
      %c0_23 = arith.constant 0 : index
      %c0_24 = arith.constant 0 : index
      %43 = vector.load %arg7[%c0_23, %c0_24] : memref<2x1xf32, #tpu.memory_space<vmem>>, vector<2x1xf32>
      %cst_25 = arith.constant 3.200000e+01 : f32
      %44 = vector.broadcast %cst_25 : f32 to vector<2x1xf32>
      %45 = arith.mulf %43, %44 : vector<2x1xf32>
      %46 = arith.divf %42, %45 : vector<2x1xf32>
      %47 = vector.shape_cast %46 : vector<2x1xf32> to vector<2x1xf32>
      %48 = vector.broadcast %47 : vector<2x1xf32> to vector<2x128xf32>
      %c0_26 = arith.constant 0 : index
      %c0_27 = arith.constant 0 : index
      %49 = vector.load %arg5[%c0_26, %c0_27] : memref<2x128xf32, #tpu.memory_space<vmem>>, vector<2x128xf32>
      tpu.vector_store %arg5[%c0_26, %c0_27], %48 {strides = array<i32>} : memref<2x128xf32, #tpu.memory_space<vmem>>, vector<2x128xf32>,
    } else {
    }
    return
  }
  func.func @transform_0(%arg0: i32, %arg1: i32) -> (i32, i32) {
    %c0_i32 = arith.constant 0 : i32
    return %arg0, %arg1 : i32, i32
  }
  func.func @transform_1(%arg0: i32, %arg1: i32) -> (i32, i32) {
    %c0_i32 = arith.constant 0 : i32
    return %arg0, %arg1 : i32, i32
  }
  func.func @transform_2(%arg0: i32, %arg1: i32) -> (i32, i32) {
    %c0_i32 = arith.constant 0 : i32
    return %arg0, %arg1 : i32, i32
  }
  func.func @transform_3(%arg0: i32, %arg1: i32) -> (i32, i32) {
    %c0_i32 = arith.constant 0 : i32
    %c0_i32_0 = arith.constant 0 : i32
    return %arg0, %c0_i32 : i32, i32
  }
}

</mosaic_0001>

<bundles_post_ra>
// kernel: tpu_custom_call.1
= control target key start
LH: loop header
LB: loop body
LE: loop exit
PB: predicated region body
PF: predicated region fallthrough
CT: control target
= control target key end

     0   :  { %8 = vsyncpa [#allocation5], 0  ;;  %s392_s0 = inlined_call_operand.hbm [shape: bf16[2,256], index: 0, kind: input, shape index: {}]   ;;  %s393_s1 = inlined_call_operand.hbm [shape: bf16[2,256], index: 1, kind: input, shape index: {}]   ;;  %s394_s2 = inlined_call_operand.vmem [shape: bf16[2,8], index: 2, kind: input, shape index: {}]   ;;  %s395_s3 = inlined_call_operand.hbm [shape: f32[2,128], index: 3, kind: output, shape index: {}]  }
   0x1   :  { %9 = vsyncpa [#allocation8], 0 }
   0x2   :  { %10 = vsyncpa [#allocation6], 0  ;;  %s338_s12 = smov [#allocation4]   ;;  %s339_s14 = smov [#allocation7]  }
   0x3   :  { %s17_s13 = sshll.u32 %s338_s12, 4  ;;  %s27_s15 = sshll.u32 %s339_s14, 4  ;;  %s18_s13 = int_to_ptr.vmem [resolvable:$true] %s17_s13  ;;  %s28_s15 = int_to_ptr.vmem [resolvable:$true] %s27_s15 }
   0x4   :  { %s280_s16 = scalar_lea.vmem %s18_s13, 32  ;;  %p285_p1 = scmp.lt.s32.totalorder %s18_s13, %s18_s13 }
   0x5   :  { %p281_p0 = scmp.ne.s32.totalorder %s18_s13, %s280_s16  ;;  %p286_p2 = scmp.lt.s32.totalorder %s280_s16, %s280_s16 }
   0x7   :  { %p287_p3 = por %p286_p2, %p285_p1 }
   0x9   :  { %p288_p4 = pnand %p287_p3, %p281_p0 }
   0xb   :  { %291 = shalt.err (!%p288_p4)
}
   0xc   :  { %20 = dma.hbm_to_vmem [thread:$0]  %s392_s0, 32, %s18_s13, [#allocation5]  }
   0xd   :  { %s300_s19 = scalar_lea.vmem %s28_s15, 32  ;;  %p305_p6 = scmp.lt.s32.totalorder %s28_s15, %s28_s15 }
   0xe   :  { %p301_p5 = scmp.ne.s32.totalorder %s28_s15, %s300_s19  ;;  %p306_p7 = scmp.lt.s32.totalorder %s300_s19, %s300_s19 }
  0x10   :  { %p307_p8 = por %p306_p7, %p305_p6 }
  0x12   :  { %p308_p9 = pnand %p307_p8, %p301_p5 }
  0x14   :  { %311 = shalt.err (!%p308_p9)
}
  0x15   :  { %30 = dma.hbm_to_vmem [thread:$0]  %s393_s1, 32, %s28_s15, [#allocation8]  }
  0x16   :  { %332 = dma.done.wait [#allocation5], 32  }
  0x17   :  { %333 = vsyncadd [#allocation5], 4294967264 }
  0x18   :  { %334 = dma.done.wait [#allocation8], 32  }
  0x19   :  { %335 = vsyncadd [#allocation8], 4294967264  ;;  %v72_v0 = vlaneseq  ;;  %v50_v3 = vld [vmem:[%s394_s2] sm:$0x1]  ;;  %v340_v8 = vmov 1983009808  }
  0x1a   :  { %v51_v4 = vunpack.c.l.bf16 %v50_v3  ;;  %v88_v9 = vunpack.c.l.s4 %v340_v8  ;;  %v341_v10 = vmov 1934713408   ;;  %v342_v18 = vmov 0.0   ;;  %s343_s1 = smov 64   ;;  %s344_s2 = smov 32  }
  0x1b   :  { %v73_v1 = vshrl.u32 %v72_v0, 7  ;;  %v119_v11 = vunpack.c.l.s4 %v341_v10  ;;  %s345_s23 = smov 96   ;;  %vm43_vm0 = vcmask 1024   ;;  %vm219_vm1 = vcmask 58368   ;;  %v46_v38 = vld [vmem:[#allocation4] sm:$0x3] }
  0x1c   :  { %v89_v12 = vunpack.c.0.s8 %v88_v9  ;;  %45 = vst.msk [vmem:[#allocation3] sm:$0x3] %vm43_vm0, %v342_v18  ;;  %44 = vst.msk [vmem:[#allocation2] sm:$0x3] %vm43_vm0, %v342_v18  ;;  %v220_v37 = vsel %vm219_vm1, %v51_v4, 0.0  ;;  %v47_v39 = vunpack.c.l.bf16 %v46_v38  ;;  %vm176_vm2 = vcmask 261120  }
  0x1d   :  { %v74_v2 = vsub.s32 0, %v73_v1  ;;  %v81_v5 = vsub.s32 1, %v73_v1  ;;  %v120_v14 = vunpack.c.0.s8 %v119_v11  ;;  %v48_v45 = vld [vmem:[#allocation7] sm:$0x3]  ;;  %vm178_vm4 = vcmask 523264   ;;  %s347_s24 = smov [#allocation9]  }
  0x1e   :  { %v377_v15 = vsub.s32 %v89_v12, %v73_v1  ;;  %v55_v40 = vand.u32 2147483647, %v47_v39  ;;  %v49_v47 = vunpack.c.l.bf16 %v48_v45  ;;  %v52_v52 = vmax.f32 %v47_v39, 0.0  ;;  %s245_s25 = sshll.u32 %s347_s24, 4  ;;  %s246_s25 = int_to_ptr.vmem [resolvable:$true] %s245_s25 }
  0x1f   :  { %v75_v6 = vrot.slane %v51_v4, %v74_v2  ;;  %v82_v7 = vrot.slane %v51_v4, %v81_v5  ;;  %v123_v17 = vsub.s32 %v120_v14, %v73_v1  ;;  %vm180_vm5 = vcmask 785408   ;;  %s312_s26 = scalar_lea.vmem %s246_s25, 32  ;;  %p317_p11 = scmp.lt.s32.totalorder %s246_s25, %s246_s25 }
  0x20   :  { %v56_v41 = vsub.f32 0.0, %v55_v40  ;;  %v53_v53 = vmul.f32 %v49_v47, %v47_v39  ;;  %v69_v59 = vmul.f32 2.0, %v49_v47  ;;  %vm209_vm6 = vcmask 1041408   ;;  %p313_p10 = scmp.ne.s32.totalorder %s246_s25, %s312_s26  ;;  %p318_p12 = scmp.lt.s32.totalorder %s312_s26, %s312_s26 }
  0x21   :  { %77 = vbcast.lane.b32.xlu0 %v75_v6, 256 }
  0x22   :  { %v57_v42 = vmul.f32 1.442695, %v56_v41  ;;  %v54_v58 = vsub.f32 %v52_v52, %v53_v53  ;;  %v70_v3 = vadd.f32 1.0, %v69_v59  ;;  %p319_p13 = por %p318_p12, %p317_p11 }
  0x24   :  { %266 = vpow2.f32 %v57_v42  ;;  %p320_p0 = pnand %p319_p13, %p313_p10 }
  0x25   :  { %84 = vbcast.lane.b32.xlu0 %v82_v7, 256 }
  0x31   :  { %v267_v43 = vpop.eup %266 }
  0x32   :  { %v59_v44 = vadd.f32 1.0, %v267_v43  ;;  %v62_v46 = vmul.f32 -0.5, %v267_v43  ;;  %v65_v51 = vand.u32 2147483647, %v267_v43 }
  0x34   :  { %268 = vlog2.f32 %v59_v44  ;;  %v63_v48 = vadd.f32 1.0, %v62_v46  ;;  %vm66_vm3 = vcmp.lt.f32.partialorder %v65_v51, 0.0004427343 }
  0x36   :  { %v64_v55 = vmul.f32 %v267_v43, %v63_v48 }
  0x41   :  { %v269_v49 = vpop.eup %268 }
  0x42   :  { %v61_v54 = vmul.f32 0.6931472, %v269_v49 }
  0x44   :  { %v67_v61 = vsel %vm66_vm3, %v64_v55, %v61_v54 }
  0x45   :  { %v68_v2 = vadd.f32 %v67_v61, %v54_v58 }
  0x47   :  { %v71_v9 = vmul.f32 %v70_v3, %v68_v2 }
  0x93   :  { %v78_v13 = vpop.permute.xlu0 %77 }
  0x94   :  { %v86_v19 = vcombine.high %v78_v13, %v342_v18  ;;  %v93_v20 = vrot.slane %v78_v13, %v377_v15 }
  0x96   :  { %v100_v26 = vrot.slane %v86_v19, %v377_v15  ;;  %v218_v19 = vld [vmem:[#allocation3] sm:$0x3] }
  0x97   :  { %v85_v16 = vpop.permute.xlu0 %84 }
  0x98   :  { %v101_v21 = vcombine.high %v85_v16, %v342_v18  ;;  %v108_v22 = vrot.slane %v85_v16, %v377_v15 }
  0x9a   :  { %v115_v23 = vrot.slane %v101_v21, %v377_v15  ;;  %v116_v24 = vcombine.low %v93_v20, %v108_v22  ;;  %v117_v25 = vcombine.high %v93_v20, %v108_v22 }
  0x9c   :  { %v131_v27 = vrot.slane %v117_v25, %v123_v17  ;;  %v124_v28 = vrot.slane %v116_v24, %v123_v17  ;;  %v132_v29 = vcombine.low %v100_v26, %v115_v23  ;;  %v133_v30 = vcombine.high %v100_v26, %v115_v23  ;;  %v185_v24 = vld [vmem:[#allocation2] sm:$0x3] }
  0x9e   :  { %157 = vrot.lane.b32.xlu0 %v131_v27, %s343_s1  ;;  %v148_v31 = vcombine.high %v124_v28, %v342_v18  ;;  %v149_v32 = vcombine.high %v131_v27, %v342_v18  ;;  %v147_v33 = vrot.slane %v133_v30, %v123_v17  ;;  %v140_v34 = vrot.slane %v132_v29, %v123_v17 }
  0xa0   :  { %153 = vrot.lane.b32.xlu1 %v148_v31, %s344_s2  ;;  %v150_v35 = vcombine.high %v140_v34, %v342_v18  ;;  %v151_v36 = vcombine.high %v147_v33, %v342_v18  ;;  %v346_v18 = vmov 0  }
  0xa1   :  { %265 = vset.pattern.permute.xlu0 %v346_v18 }
  0xa2   :  { %161 = vrot.lane.b32.xlu0 %v149_v32, %s345_s23 }
  0xa4   :  { %169 = vrot.lane.b32.xlu1 %v147_v33, %s343_s1 }
  0xa8   :  { %165 = vrot.lane.b32.xlu1 %v150_v35, %s344_s2 }
  0xac   :  { %173 = vrot.lane.b32.xlu1 %v151_v36, %s345_s23 }
  0xc1   :  { %221 = vadd.xlane.f32.xlu0 %v220_v37 }
 0x110   :  { %v158_v56 = vpop.permute.xlu0 %157 }
 0x112   :  { %v154_v50 = vpop.permute.xlu1 %153 }
 0x113   :  { %v177_v60 = vsel %vm176_vm2, %v124_v28, %v154_v50 }
 0x114   :  { %v162_v0 = vpop.permute.xlu0 %161  ;;  %v179_v1 = vsel %vm178_vm4, %v177_v60, %v158_v56 }
 0x115   :  { %v181_v6 = vsel %vm180_vm5, %v179_v1, %v162_v0 }
 0x116   :  { %v170_v57 = vpop.permute.xlu1 %169 }
 0x11a   :  { %v166_v62 = vpop.permute.xlu1 %165 }
 0x11b   :  { %v182_v63 = vsel %vm176_vm2, %v140_v34, %v166_v62 }
 0x11c   :  { %v183_v4 = vsel %vm178_vm4, %v182_v63, %v170_v57 }
 0x11e   :  { %v174_v5 = vpop.permute.xlu1 %173 }
 0x11f   :  { %v184_v7 = vsel %vm180_vm5, %v183_v4, %v174_v5 }
 0x120   :  { %v188_v8 = vcombine.low %v181_v6, %v184_v7 }
 0x122   :  { %v195_v10 = vrot.slane %v188_v8, %v377_v15 }
 0x124   :  { %v197_v11 = vmul.f32 %v195_v10, %v71_v9 }
 0x126   :  { %v205_v12 = vrot.slane %v197_v11, %v377_v15 }
 0x128   :  { %v206_v13 = vcombine.high %v205_v12, %v205_v12  ;;  %v210_v14 = vsel %vm209_vm6, %v205_v12, 0.0 }
 0x12a   :  { %v211_v16 = vsel %vm209_vm6, %v206_v13, 0.0 }
 0x12b   :  { %v212_v17 = vadd.f32 %v211_v16, %v210_v14 }
 0x12d   :  { %213 = vadd.xlane.f32.xlu1 %v212_v17 }
 0x14a   :  { %v222_v20 = vpop.xlane.xlu0 %221 }
 0x14b   :  { %v223_v21 = vadd.f32 %v222_v20, %v218_v19 }
 0x14d   :  { %224 = vst.msk [vmem:[#allocation3] sm:$0x3] %vm43_vm0, %v223_v21 }
 0x154   :  { %v229_v22 = vld [vmem:[#allocation3] sm:$0x3] }
 0x155   :  { %v230_v23 = vmul.f32 32.0, %v229_v22 }
 0x157   :  { %270 = vrcp.f32 %v230_v23 }
 0x164   :  { %v271_v15 = vpop.eup %270 }
 0x1b6   :  { %v214_v25 = vpop.xlane.xlu1 %213 }
 0x1b7   :  { %v215_v26 = vadd.f32 %v214_v25, %v185_v24 }
 0x1b9   :  { %217 = vst.msk [vmem:[#allocation2] sm:$0x3] %vm43_vm0, %v215_v26 }
 0x1c0   :  { %v228_v27 = vld [vmem:[#allocation2] sm:$0x3] }
 0x1c1   :  { %v232_v28 = vmul.f32 %v271_v15, %v228_v27 }
 0x1c3   :  { %235 = vperm.xlu0 %265, %v232_v28  }
 0x23e   :  { %v236_v29 = vpop.permute.xlu0 %235 }
 0x23f   :  { %238 = vst [vmem:[#allocation9] sm:$0x3] %v236_v29 }
 0x240   :  { %323 = shalt.err (!%p320_p0)
}
 0x241   :  { %248 = dma.vmem_to_hbm [thread:$0]  %s246_s25, 32, %s395_s3, [#allocation6]  }
 0x242   :  { %336 = dma.done.wait [#allocation6], 32  }
 0x243   :  { %337 = vsyncadd [#allocation6], 4294967264 }
 0x244   :  { %252 = vsyncpa [#allocation5], 1 }
 0x245   :  { %253 = vsyncpa [#allocation8], 1 }
 0x246   :  { %254 = vsyncpa [#allocation6], 1 }

</bundles_post_ra>
